<compile_context>
chip_gen: v5e
topology: v5e:2x2
jax: 0.10.0
libtpu: 0.0.40
codegen_flags: <defaults>
</compile_context>

<pallas_src>
import functools
import math

import jax
import jax.numpy as jnp
from jax import lax
from jax.experimental import pallas as pl
from jax.experimental.pallas import tpu as pltpu


def _grcu_cell_kernel(wusr_ref, wht_ref, uht_ref, b_ref, z_ref, q0_ref,
                      out_ref, *, dim, n_steps):
    """Full T-step matrix-GRU recurrence for ONE node (node axis squeezed).

    Ref shapes:
      wusr_ref : (2*dim, 2*dim) bf16   [[W_u^T, W_r^T], [U_u^T, U_r^T]]
      wht_ref  : (dim, dim)     bf16   W_h^T
      uht_ref  : (dim, dim)     bf16   U_h^T
      b_ref    : (3, dim)       f32    rows = (b_u, b_r, b_h)
      z_ref    : (n_steps, dim) f32    post-GAT node embedding per timestep
      q0_ref   : (1, dim)       f32    initial GAT_features row for this node
      out_ref  : (n_steps, dim) f32    evolved GAT_features per timestep
    """
    # Weights / biases loaded once per node, hoisted out of the time loop.
    wusr = wusr_ref[...]
    wht = wht_ref[...]
    uht = uht_ref[...]
    b_u = b_ref[0:1, :]
    b_r = b_ref[1:2, :]
    b_h = b_ref[2:3, :]

    def step(t, q):                                    # q: (1, dim) f32
        z = z_ref[pl.ds(t, 1), :]                      # (1, dim) f32
        # Fused update/reset pre-activation: one MXU stream, K = 2*dim.
        zq = jnp.concatenate([z, q], axis=1).astype(jnp.bfloat16)   # (1, 2*dim)
        sr = jnp.dot(zq, wusr, preferred_element_type=jnp.float32)  # (1, 2*dim)
        upd = jax.nn.sigmoid(sr[:, :dim] + b_u)
        rst = jax.nn.sigmoid(sr[:, dim:] + b_r)
        # Candidate gate: tanh(W_h z + U_h (r*q) + b_h).
        hz = jnp.dot(z.astype(jnp.bfloat16), wht,
                     preferred_element_type=jnp.float32)
        hr = jnp.dot((rst * q).astype(jnp.bfloat16), uht,
                     preferred_element_type=jnp.float32)
        htil = jnp.tanh(hz + hr + b_h)
        q_new = (1.0 - upd) * q + upd * htil
        out_ref[pl.ds(t, 1), :] = q_new.astype(out_ref.dtype)
        return q_new

    lax.fori_loop(0, n_steps, step, q0_ref[...], unroll=n_steps <= 16)


def grcu_evolve(Wu, Uu, bu, Wr, Ur, br, Wh, Uh, bh, z_seq, q_init):
    """GRCU evolve loop (GAT already applied) in a single pallas_call.

    Args are per-node stacked parameters: W*/U* (nodes, D, D), b* (nodes, D);
    z_seq (nodes, T, D) are the per-timestep post-GAT node embeddings;
    q_init (nodes, D) is GAT_init_features.
    Returns (nodes, T, D); out[:, t, :] == GRCU's out_seq[t].
    """
    nodes, T, dim = z_seq.shape
    assert q_init.shape == (nodes, dim)
    for w in (Wu, Uu, Wr, Ur, Wh, Uh):
        assert w.shape == (nodes, dim, dim)
    for b in (bu, br, bh):
        assert b.shape == (nodes, dim)

    # ---- Parameter packing (in a real model, done once at load time). -------
    # Row-vector convention inside the kernel, so weights are pre-transposed;
    # matmul operands stored in bf16 (f32 accumulation happens in the kernel).
    def tr(w):
        return jnp.swapaxes(w, -1, -2)

    wusr = jnp.concatenate(
        [jnp.concatenate([tr(Wu), tr(Uu)], axis=-2),    # (nodes, 2D, D)
         jnp.concatenate([tr(Wr), tr(Ur)], axis=-2)],   # (nodes, 2D, D)
        axis=-1).astype(jnp.bfloat16)                   # (nodes, 2D, 2D)
    wht = tr(Wh).astype(jnp.bfloat16)                   # (nodes, D, D)
    uht = tr(Uh).astype(jnp.bfloat16)                   # (nodes, D, D)
    bias = jnp.stack([bu, br, bh], axis=1).astype(jnp.float32)  # (nodes, 3, D)
    q0 = q_init.astype(jnp.float32).reshape(nodes, 1, dim)
    z_seq = z_seq.astype(jnp.float32)

    kernel = functools.partial(_grcu_cell_kernel, dim=dim, n_steps=T)

    # Advisory cost estimate: 6*D^2 MACs and 3*D transcendentals per node-step.
    flops = int(nodes) * int(T) * 12 * int(dim) * int(dim)
    transcendentals = int(nodes) * int(T) * 3 * int(dim)
    bytes_accessed = ((wusr.size + wht.size + uht.size) * 2
                      + (bias.size + z_seq.size + q0.size) * 4
                      + nodes * T * dim * 4)

    return pl.pallas_call(
        kernel,
        out_shape=jax.ShapeDtypeStruct((nodes, T, dim), jnp.float32),
        grid=(nodes,),
        in_specs=[
            pl.BlockSpec((None, 2 * dim, 2 * dim), lambda n: (n, 0, 0)),
            pl.BlockSpec((None, dim, dim), lambda n: (n, 0, 0)),
            pl.BlockSpec((None, dim, dim), lambda n: (n, 0, 0)),
            pl.BlockSpec((None, 3, dim), lambda n: (n, 0, 0)),
            pl.BlockSpec((None, T, dim), lambda n: (n, 0, 0)),
            pl.BlockSpec((None, 1, dim), lambda n: (n, 0, 0)),
        ],
        out_specs=pl.BlockSpec((None, T, dim), lambda n: (n, 0, 0)),
        compiler_params=pltpu.CompilerParams(
            dimension_semantics=("parallel",),      # nodes split across TCs
            vmem_limit_bytes=48 * 1024 * 1024,      # under v7x's 64 MiB VMEM
        ),
        cost_estimate=pl.CostEstimate(
            flops=flops,
            transcendentals=transcendentals,
            bytes_accessed=int(bytes_accessed)),
    )(wusr, wht, uht, bias, z_seq, q0)


def grcu_evolve_ref(Wu, Uu, bu, Wr, Ur, br, Wh, Uh, bh, z_seq, q_init):
    """Pure-JAX reference (mirrors the kernel's bf16-input / f32-acc precision)."""
    bf = jnp.bfloat16

    def mv(W, v):   # per-node matvec: (nodes, D, D) @ (nodes, D) -> (nodes, D)
        return jnp.einsum('nij,nj->ni', W.astype(bf), v.astype(bf),
                          preferred_element_type=jnp.float32)

    q = q_init.astype(jnp.float32)
    outs = []
    for t in range(z_seq.shape[1]):
        z = z_seq[:, t, :]
        upd = jax.nn.sigmoid(mv(Wu, z) + mv(Uu, q) + bu)
        rst = jax.nn.sigmoid(mv(Wr, z) + mv(Ur, q) + br)
        htil = jnp.tanh(mv(Wh, z) + mv(Uh, rst * q) + bh)
        q = (1.0 - upd) * q + upd * htil
        outs.append(q)
    return jnp.stack(outs, axis=1)   # (nodes, T, D)


def _xavier_normal(key, shape, dtype=jnp.float32):
    fan_in, fan_out = shape[-2], shape[-1]
    std = math.sqrt(2.0 / (fan_in + fan_out))
    return std * jax.random.normal(key, shape, dtype=dtype)


if __name__ == "__main__":
    nodes, dim, T = 8, 32, 4           # finaloutfeat = 32, small demo shapes
    key = jax.random.PRNGKey(0)
    ks = jax.random.split(key, 11)

    # Per-node stacked parameters for the three gates (each node owns a cell).
    Wu = _xavier_normal(ks[0], (nodes, dim, dim))
    Uu = _xavier_normal(ks[1], (nodes, dim, dim))
    Wr = _xavier_normal(ks[2], (nodes, dim, dim))
    Ur = _xavier_normal(ks[3], (nodes, dim, dim))
    Wh = _xavier_normal(ks[4], (nodes, dim, dim))
    Uh = _xavier_normal(ks[5], (nodes, dim, dim))
    # Module inits biases to zero; use small non-zero values so the bias path
    # is actually exercised by the correctness check.
    bu = 0.1 * jax.random.normal(ks[6], (nodes, dim), dtype=jnp.float32)
    br = 0.1 * jax.random.normal(ks[7], (nodes, dim), dtype=jnp.float32)
    bh = 0.1 * jax.random.normal(ks[8], (nodes, dim), dtype=jnp.float32)

    q_init = _xavier_normal(ks[9], (nodes, dim))        # GAT_init_features
    # TODO(synk): GAT_IND is not defined in the spec; its per-timestep output
    # (node embeddings after attention) is modelled as a given input sequence.
    z_seq = jax.random.normal(ks[10], (nodes, T, dim), dtype=jnp.float32)

    out = grcu_evolve(Wu, Uu, bu, Wr, Ur, br, Wh, Uh, bh, z_seq, q_init)
    out = jax.block_until_ready(out)

    ref = grcu_evolve_ref(Wu, Uu, bu, Wr, Ur, br, Wh, Uh, bh, z_seq, q_init)
    assert out.shape == (nodes, T, dim)
    max_err = float(jnp.max(jnp.abs(out - ref)))
    assert jnp.allclose(out, ref, atol=3e-3, rtol=3e-3), max_err

    print("KERNEL_OK")
</pallas_src>

<mosaic_0001>
module attributes {stable_mosaic.version = 11 : i64} {
  func.func @_grcu_cell_kernel(%arg0: i32, %arg1: memref<1x64x64xbf16, #tpu.memory_space<vmem>>, %arg2: memref<1x32x32xbf16, #tpu.memory_space<vmem>>, %arg3: memref<1x32x32xbf16, #tpu.memory_space<vmem>>, %arg4: memref<1x3x32xf32, #tpu.memory_space<vmem>>, %arg5: memref<1x4x32xf32, #tpu.memory_space<vmem>>, %arg6: memref<1x1x32xf32, #tpu.memory_space<vmem>>, %arg7: memref<1x4x32xf32, #tpu.memory_space<vmem>>) attributes {dimension_semantics = [#tpu.dimension_semantics<parallel>], iteration_bounds = array<i64: 8>, scalar_prefetch = 0 : i64, scratch_operands = 0 : i64, tpu.core_type = #tpu.core_type<tc>, window_params = [{transform_indices = @transform_0, window_bounds = array<i64: 1, 64, 64>}, {transform_indices = @transform_1, window_bounds = array<i64: 1, 32, 32>}, {transform_indices = @transform_2, window_bounds = array<i64: 1, 32, 32>}, {transform_indices = @transform_3, window_bounds = array<i64: 1, 3, 32>}, {transform_indices = @transform_4, window_bounds = array<i64: 1, 4, 32>}, {transform_indices = @transform_5, window_bounds = array<i64: 1, 1, 32>}, {transform_indices = @transform_6, window_bounds = array<i64: 1, 4, 32>}]} {
    %c0 = arith.constant 0 : index
    %c0_0 = arith.constant 0 : index
    %c0_1 = arith.constant 0 : index
    %0 = vector.load %arg1[%c0, %c0_0, %c0_1] : memref<1x64x64xbf16, #tpu.memory_space<vmem>>, vector<1x64x64xbf16>
    %1 = vector.shape_cast %0 : vector<1x64x64xbf16> to vector<64x64xbf16>
    %c0_2 = arith.constant 0 : index
    %c0_3 = arith.constant 0 : index
    %c0_4 = arith.constant 0 : index
    %2 = vector.load %arg2[%c0_2, %c0_3, %c0_4] : memref<1x32x32xbf16, #tpu.memory_space<vmem>>, vector<1x32x32xbf16>
    %3 = vector.shape_cast %2 : vector<1x32x32xbf16> to vector<32x32xbf16>
    %c0_5 = arith.constant 0 : index
    %c0_6 = arith.constant 0 : index
    %c0_7 = arith.constant 0 : index
    %4 = vector.load %arg3[%c0_5, %c0_6, %c0_7] : memref<1x32x32xbf16, #tpu.memory_space<vmem>>, vector<1x32x32xbf16>
    %5 = vector.shape_cast %4 : vector<1x32x32xbf16> to vector<32x32xbf16>
    %c0_8 = arith.constant 0 : index
    %c0_9 = arith.constant 0 : index
    %c0_10 = arith.constant 0 : index
    %6 = vector.load %arg4[%c0_8, %c0_9, %c0_10] : memref<1x3x32xf32, #tpu.memory_space<vmem>>, vector<1x1x32xf32>
    %7 = vector.shape_cast %6 : vector<1x1x32xf32> to vector<1x32xf32>
    %c0_11 = arith.constant 0 : index
    %c1 = arith.constant 1 : index
    %c0_12 = arith.constant 0 : index
    %8 = vector.load %arg4[%c0_11, %c1, %c0_12] : memref<1x3x32xf32, #tpu.memory_space<vmem>>, vector<1x1x32xf32>
    %9 = vector.shape_cast %8 : vector<1x1x32xf32> to vector<1x32xf32>
    %c0_13 = arith.constant 0 : index
    %c2 = arith.constant 2 : index
    %c0_14 = arith.constant 0 : index
    %10 = vector.load %arg4[%c0_13, %c2, %c0_14] : memref<1x3x32xf32, #tpu.memory_space<vmem>>, vector<1x1x32xf32>
    %11 = vector.shape_cast %10 : vector<1x1x32xf32> to vector<1x32xf32>
    %c0_15 = arith.constant 0 : index
    %c0_16 = arith.constant 0 : index
    %c0_17 = arith.constant 0 : index
    %12 = vector.load %arg6[%c0_15, %c0_16, %c0_17] : memref<1x1x32xf32, #tpu.memory_space<vmem>>, vector<1x1x32xf32>
    %13 = vector.shape_cast %12 : vector<1x1x32xf32> to vector<1x32xf32>
    %c0_i32 = arith.constant 0 : i32
    %c0_18 = arith.constant 0 : index
    %14 = arith.index_cast %c0_i32 : i32 to index
    %c0_19 = arith.constant 0 : index
    %15 = vector.load %arg5[%c0_18, %14, %c0_19] : memref<1x4x32xf32, #tpu.memory_space<vmem>>, vector<1x1x32xf32>
    %16 = vector.shape_cast %15 : vector<1x1x32xf32> to vector<1x32xf32>
    %17 = tpu.concatenate %16, %13 in 1 : vector<1x32xf32>, vector<1x32xf32> -> vector<1x64xf32>
    %18 = arith.truncf %17 : vector<1x64xf32> to vector<1x64xbf16>
    %cst = arith.constant dense<0.000000e+00> : vector<1x64xf32>
    %19 = tpu.matmul %18, %1, %cst {dimension_numbers = #tpu.dot_dimension_numbers<[1], [0], [0], [1], [0, 0, 1, 1], [], []>} : vector<1x64xbf16>, vector<64x64xbf16>, vector<1x64xf32> -> vector<1x64xf32>
    %20 = vector.extract_strided_slice %19 {offsets = [0, 0], sizes = [1, 32], strides = [1, 1]} : vector<1x64xf32> to vector<1x32xf32>
    %21 = arith.addf %20, %7 : vector<1x32xf32>
    %22 = arith.negf %21 : vector<1x32xf32>
    %23 = math.exp %22 : vector<1x32xf32>
    %cst_20 = arith.constant 1.000000e+00 : f32
    %24 = vector.broadcast %cst_20 : f32 to vector<1x32xf32>
    %25 = arith.addf %24, %23 : vector<1x32xf32>
    %26 = arith.divf %24, %25 : vector<1x32xf32>
    %27 = vector.extract_strided_slice %19 {offsets = [0, 32], sizes = [1, 32], strides = [1, 1]} : vector<1x64xf32> to vector<1x32xf32>
    %28 = arith.addf %27, %9 : vector<1x32xf32>
    %29 = arith.negf %28 : vector<1x32xf32>
    %30 = math.exp %29 : vector<1x32xf32>
    %cst_21 = arith.constant 1.000000e+00 : f32
    %31 = vector.broadcast %cst_21 : f32 to vector<1x32xf32>
    %32 = arith.addf %31, %30 : vector<1x32xf32>
    %33 = arith.divf %31, %32 : vector<1x32xf32>
    %34 = arith.truncf %16 : vector<1x32xf32> to vector<1x32xbf16>
    %cst_22 = arith.constant dense<0.000000e+00> : vector<1x32xf32>
    %35 = tpu.matmul %34, %3, %cst_22 {dimension_numbers = #tpu.dot_dimension_numbers<[1], [0], [0], [1], [0, 0, 1, 1], [], []>} : vector<1x32xbf16>, vector<32x32xbf16>, vector<1x32xf32> -> vector<1x32xf32>
    %36 = arith.mulf %33, %13 : vector<1x32xf32>
    %37 = arith.truncf %36 : vector<1x32xf32> to vector<1x32xbf16>
    %cst_23 = arith.constant dense<0.000000e+00> : vector<1x32xf32>
    %38 = tpu.matmul %37, %5, %cst_23 {dimension_numbers = #tpu.dot_dimension_numbers<[1], [0], [0], [1], [0, 0, 1, 1], [], []>} : vector<1x32xbf16>, vector<32x32xbf16>, vector<1x32xf32> -> vector<1x32xf32>
    %39 = arith.addf %35, %38 : vector<1x32xf32>
    %40 = arith.addf %39, %11 : vector<1x32xf32>
    %41 = math.tanh %40 : vector<1x32xf32>
    %cst_24 = arith.constant 1.000000e+00 : f32
    %42 = vector.broadcast %cst_24 : f32 to vector<1x32xf32>
    %43 = arith.subf %42, %26 : vector<1x32xf32>
    %44 = arith.mulf %43, %13 : vector<1x32xf32>
    %45 = arith.mulf %26, %41 : vector<1x32xf32>
    %46 = arith.addf %44, %45 : vector<1x32xf32>
    %c0_25 = arith.constant 0 : index
    %47 = arith.index_cast %c0_i32 : i32 to index
    %c0_26 = arith.constant 0 : index
    %48 = vector.load %arg7[%c0_25, %47, %c0_26] : memref<1x4x32xf32, #tpu.memory_space<vmem>>, vector<1x1x32xf32>
    %49 = vector.shape_cast %48 : vector<1x1x32xf32> to vector<1x32xf32>
    %50 = vector.shape_cast %46 : vector<1x32xf32> to vector<1x1x32xf32>
    tpu.vector_store %arg7[%c0_25, %47, %c0_26], %50 {strides = array<i32>} : memref<1x4x32xf32, #tpu.memory_space<vmem>>, vector<1x1x32xf32>,
    %c1_i32 = arith.constant 1 : i32
    %c0_27 = arith.constant 0 : index
    %51 = arith.index_cast %c1_i32 : i32 to index
    %c0_28 = arith.constant 0 : index
    %52 = vector.load %arg5[%c0_27, %51, %c0_28] : memref<1x4x32xf32, #tpu.memory_space<vmem>>, vector<1x1x32xf32>
    %53 = vector.shape_cast %52 : vector<1x1x32xf32> to vector<1x32xf32>
    %54 = tpu.concatenate %53, %46 in 1 : vector<1x32xf32>, vector<1x32xf32> -> vector<1x64xf32>
    %55 = arith.truncf %54 : vector<1x64xf32> to vector<1x64xbf16>
    %cst_29 = arith.constant dense<0.000000e+00> : vector<1x64xf32>
    %56 = tpu.matmul %55, %1, %cst_29 {dimension_numbers = #tpu.dot_dimension_numbers<[1], [0], [0], [1], [0, 0, 1, 1], [], []>} : vector<1x64xbf16>, vector<64x64xbf16>, vector<1x64xf32> -> vector<1x64xf32>
    %57 = vector.extract_strided_slice %56 {offsets = [0, 0], sizes = [1, 32], strides = [1, 1]} : vector<1x64xf32> to vector<1x32xf32>
    %58 = arith.addf %57, %7 : vector<1x32xf32>
    %59 = arith.negf %58 : vector<1x32xf32>
    %60 = math.exp %59 : vector<1x32xf32>
    %cst_30 = arith.constant 1.000000e+00 : f32
    %61 = vector.broadcast %cst_30 : f32 to vector<1x32xf32>
    %62 = arith.addf %61, %60 : vector<1x32xf32>
    %63 = arith.divf %61, %62 : vector<1x32xf32>
    %64 = vector.extract_strided_slice %56 {offsets = [0, 32], sizes = [1, 32], strides = [1, 1]} : vector<1x64xf32> to vector<1x32xf32>
    %65 = arith.addf %64, %9 : vector<1x32xf32>
    %66 = arith.negf %65 : vector<1x32xf32>
    %67 = math.exp %66 : vector<1x32xf32>
    %cst_31 = arith.constant 1.000000e+00 : f32
    %68 = vector.broadcast %cst_31 : f32 to vector<1x32xf32>
    %69 = arith.addf %68, %67 : vector<1x32xf32>
    %70 = arith.divf %68, %69 : vector<1x32xf32>
    %71 = arith.truncf %53 : vector<1x32xf32> to vector<1x32xbf16>
    %cst_32 = arith.constant dense<0.000000e+00> : vector<1x32xf32>
    %72 = tpu.matmul %71, %3, %cst_32 {dimension_numbers = #tpu.dot_dimension_numbers<[1], [0], [0], [1], [0, 0, 1, 1], [], []>} : vector<1x32xbf16>, vector<32x32xbf16>, vector<1x32xf32> -> vector<1x32xf32>
    %73 = arith.mulf %70, %46 : vector<1x32xf32>
    %74 = arith.truncf %73 : vector<1x32xf32> to vector<1x32xbf16>
    %cst_33 = arith.constant dense<0.000000e+00> : vector<1x32xf32>
    %75 = tpu.matmul %74, %5, %cst_33 {dimension_numbers = #tpu.dot_dimension_numbers<[1], [0], [0], [1], [0, 0, 1, 1], [], []>} : vector<1x32xbf16>, vector<32x32xbf16>, vector<1x32xf32> -> vector<1x32xf32>
    %76 = arith.addf %72, %75 : vector<1x32xf32>
    %77 = arith.addf %76, %11 : vector<1x32xf32>
    %78 = math.tanh %77 : vector<1x32xf32>
    %cst_34 = arith.constant 1.000000e+00 : f32
    %79 = vector.broadcast %cst_34 : f32 to vector<1x32xf32>
    %80 = arith.subf %79, %63 : vector<1x32xf32>
    %81 = arith.mulf %80, %46 : vector<1x32xf32>
    %82 = arith.mulf %63, %78 : vector<1x32xf32>
    %83 = arith.addf %81, %82 : vector<1x32xf32>
    %c0_35 = arith.constant 0 : index
    %84 = arith.index_cast %c1_i32 : i32 to index
    %c0_36 = arith.constant 0 : index
    %85 = vector.load %arg7[%c0_35, %84, %c0_36] : memref<1x4x32xf32, #tpu.memory_space<vmem>>, vector<1x1x32xf32>
    %86 = vector.shape_cast %85 : vector<1x1x32xf32> to vector<1x32xf32>
    %87 = vector.shape_cast %83 : vector<1x32xf32> to vector<1x1x32xf32>
    tpu.vector_store %arg7[%c0_35, %84, %c0_36], %87 {strides = array<i32>} : memref<1x4x32xf32, #tpu.memory_space<vmem>>, vector<1x1x32xf32>,
    %c2_i32 = arith.constant 2 : i32
    %c0_37 = arith.constant 0 : index
    %88 = arith.index_cast %c2_i32 : i32 to index
    %c0_38 = arith.constant 0 : index
    %89 = vector.load %arg5[%c0_37, %88, %c0_38] : memref<1x4x32xf32, #tpu.memory_space<vmem>>, vector<1x1x32xf32>
    %90 = vector.shape_cast %89 : vector<1x1x32xf32> to vector<1x32xf32>
    %91 = tpu.concatenate %90, %83 in 1 : vector<1x32xf32>, vector<1x32xf32> -> vector<1x64xf32>
    %92 = arith.truncf %91 : vector<1x64xf32> to vector<1x64xbf16>
    %cst_39 = arith.constant dense<0.000000e+00> : vector<1x64xf32>
    %93 = tpu.matmul %92, %1, %cst_39 {dimension_numbers = #tpu.dot_dimension_numbers<[1], [0], [0], [1], [0, 0, 1, 1], [], []>} : vector<1x64xbf16>, vector<64x64xbf16>, vector<1x64xf32> -> vector<1x64xf32>
    %94 = vector.extract_strided_slice %93 {offsets = [0, 0], sizes = [1, 32], strides = [1, 1]} : vector<1x64xf32> to vector<1x32xf32>
    %95 = arith.addf %94, %7 : vector<1x32xf32>
    %96 = arith.negf %95 : vector<1x32xf32>
    %97 = math.exp %96 : vector<1x32xf32>
    %cst_40 = arith.constant 1.000000e+00 : f32
    %98 = vector.broadcast %cst_40 : f32 to vector<1x32xf32>
    %99 = arith.addf %98, %97 : vector<1x32xf32>
    %100 = arith.divf %98, %99 : vector<1x32xf32>
    %101 = vector.extract_strided_slice %93 {offsets = [0, 32], sizes = [1, 32], strides = [1, 1]} : vector<1x64xf32> to vector<1x32xf32>
    %102 = arith.addf %101, %9 : vector<1x32xf32>
    %103 = arith.negf %102 : vector<1x32xf32>
    %104 = math.exp %103 : vector<1x32xf32>
    %cst_41 = arith.constant 1.000000e+00 : f32
    %105 = vector.broadcast %cst_41 : f32 to vector<1x32xf32>
    %106 = arith.addf %105, %104 : vector<1x32xf32>
    %107 = arith.divf %105, %106 : vector<1x32xf32>
    %108 = arith.truncf %90 : vector<1x32xf32> to vector<1x32xbf16>
    %cst_42 = arith.constant dense<0.000000e+00> : vector<1x32xf32>
    %109 = tpu.matmul %108, %3, %cst_42 {dimension_numbers = #tpu.dot_dimension_numbers<[1], [0], [0], [1], [0, 0, 1, 1], [], []>} : vector<1x32xbf16>, vector<32x32xbf16>, vector<1x32xf32> -> vector<1x32xf32>
    %110 = arith.mulf %107, %83 : vector<1x32xf32>
    %111 = arith.truncf %110 : vector<1x32xf32> to vector<1x32xbf16>
    %cst_43 = arith.constant dense<0.000000e+00> : vector<1x32xf32>
    %112 = tpu.matmul %111, %5, %cst_43 {dimension_numbers = #tpu.dot_dimension_numbers<[1], [0], [0], [1], [0, 0, 1, 1], [], []>} : vector<1x32xbf16>, vector<32x32xbf16>, vector<1x32xf32> -> vector<1x32xf32>
    %113 = arith.addf %109, %112 : vector<1x32xf32>
    %114 = arith.addf %113, %11 : vector<1x32xf32>
    %115 = math.tanh %114 : vector<1x32xf32>
    %cst_44 = arith.constant 1.000000e+00 : f32
    %116 = vector.broadcast %cst_44 : f32 to vector<1x32xf32>
    %117 = arith.subf %116, %100 : vector<1x32xf32>
    %118 = arith.mulf %117, %83 : vector<1x32xf32>
    %119 = arith.mulf %100, %115 : vector<1x32xf32>
    %120 = arith.addf %118, %119 : vector<1x32xf32>
    %c0_45 = arith.constant 0 : index
    %121 = arith.index_cast %c2_i32 : i32 to index
    %c0_46 = arith.constant 0 : index
    %122 = vector.load %arg7[%c0_45, %121, %c0_46] : memref<1x4x32xf32, #tpu.memory_space<vmem>>, vector<1x1x32xf32>
    %123 = vector.shape_cast %122 : vector<1x1x32xf32> to vector<1x32xf32>
    %124 = vector.shape_cast %120 : vector<1x32xf32> to vector<1x1x32xf32>
    tpu.vector_store %arg7[%c0_45, %121, %c0_46], %124 {strides = array<i32>} : memref<1x4x32xf32, #tpu.memory_space<vmem>>, vector<1x1x32xf32>,
    %c3_i32 = arith.constant 3 : i32
    %c0_47 = arith.constant 0 : index
    %125 = arith.index_cast %c3_i32 : i32 to index
    %c0_48 = arith.constant 0 : index
    %126 = vector.load %arg5[%c0_47, %125, %c0_48] : memref<1x4x32xf32, #tpu.memory_space<vmem>>, vector<1x1x32xf32>
    %127 = vector.shape_cast %126 : vector<1x1x32xf32> to vector<1x32xf32>
    %128 = tpu.concatenate %127, %120 in 1 : vector<1x32xf32>, vector<1x32xf32> -> vector<1x64xf32>
    %129 = arith.truncf %128 : vector<1x64xf32> to vector<1x64xbf16>
    %cst_49 = arith.constant dense<0.000000e+00> : vector<1x64xf32>
    %130 = tpu.matmul %129, %1, %cst_49 {dimension_numbers = #tpu.dot_dimension_numbers<[1], [0], [0], [1], [0, 0, 1, 1], [], []>} : vector<1x64xbf16>, vector<64x64xbf16>, vector<1x64xf32> -> vector<1x64xf32>
    %131 = vector.extract_strided_slice %130 {offsets = [0, 0], sizes = [1, 32], strides = [1, 1]} : vector<1x64xf32> to vector<1x32xf32>
    %132 = arith.addf %131, %7 : vector<1x32xf32>
    %133 = arith.negf %132 : vector<1x32xf32>
    %134 = math.exp %133 : vector<1x32xf32>
    %cst_50 = arith.constant 1.000000e+00 : f32
    %135 = vector.broadcast %cst_50 : f32 to vector<1x32xf32>
    %136 = arith.addf %135, %134 : vector<1x32xf32>
    %137 = arith.divf %135, %136 : vector<1x32xf32>
    %138 = vector.extract_strided_slice %130 {offsets = [0, 32], sizes = [1, 32], strides = [1, 1]} : vector<1x64xf32> to vector<1x32xf32>
    %139 = arith.addf %138, %9 : vector<1x32xf32>
    %140 = arith.negf %139 : vector<1x32xf32>
    %141 = math.exp %140 : vector<1x32xf32>
    %cst_51 = arith.constant 1.000000e+00 : f32
    %142 = vector.broadcast %cst_51 : f32 to vector<1x32xf32>
    %143 = arith.addf %142, %141 : vector<1x32xf32>
    %144 = arith.divf %142, %143 : vector<1x32xf32>
    %145 = arith.truncf %127 : vector<1x32xf32> to vector<1x32xbf16>
    %cst_52 = arith.constant dense<0.000000e+00> : vector<1x32xf32>
    %146 = tpu.matmul %145, %3, %cst_52 {dimension_numbers = #tpu.dot_dimension_numbers<[1], [0], [0], [1], [0, 0, 1, 1], [], []>} : vector<1x32xbf16>, vector<32x32xbf16>, vector<1x32xf32> -> vector<1x32xf32>
    %147 = arith.mulf %144, %120 : vector<1x32xf32>
    %148 = arith.truncf %147 : vector<1x32xf32> to vector<1x32xbf16>
    %cst_53 = arith.constant dense<0.000000e+00> : vector<1x32xf32>
    %149 = tpu.matmul %148, %5, %cst_53 {dimension_numbers = #tpu.dot_dimension_numbers<[1], [0], [0], [1], [0, 0, 1, 1], [], []>} : vector<1x32xbf16>, vector<32x32xbf16>, vector<1x32xf32> -> vector<1x32xf32>
    %150 = arith.addf %146, %149 : vector<1x32xf32>
    %151 = arith.addf %150, %11 : vector<1x32xf32>
    %152 = math.tanh %151 : vector<1x32xf32>
    %cst_54 = arith.constant 1.000000e+00 : f32
    %153 = vector.broadcast %cst_54 : f32 to vector<1x32xf32>
    %154 = arith.subf %153, %137 : vector<1x32xf32>
    %155 = arith.mulf %154, %120 : vector<1x32xf32>
    %156 = arith.mulf %137, %152 : vector<1x32xf32>
    %157 = arith.addf %155, %156 : vector<1x32xf32>
    %c0_55 = arith.constant 0 : index
    %158 = arith.index_cast %c3_i32 : i32 to index
    %c0_56 = arith.constant 0 : index
    %159 = vector.load %arg7[%c0_55, %158, %c0_56] : memref<1x4x32xf32, #tpu.memory_space<vmem>>, vector<1x1x32xf32>
    %160 = vector.shape_cast %159 : vector<1x1x32xf32> to vector<1x32xf32>
    %161 = vector.shape_cast %157 : vector<1x32xf32> to vector<1x1x32xf32>
    tpu.vector_store %arg7[%c0_55, %158, %c0_56], %161 {strides = array<i32>} : memref<1x4x32xf32, #tpu.memory_space<vmem>>, vector<1x1x32xf32>,
    %c4_i32 = arith.constant 4 : i32
    return
  }
  func.func @transform_0(%arg0: i32) -> (i32, i32, i32) {
    %c0_i32 = arith.constant 0 : i32
    %c0_i32_0 = arith.constant 0 : i32
    %c0_i32_1 = arith.constant 0 : i32
    return %arg0, %c0_i32, %c0_i32_0 : i32, i32, i32
  }
  func.func @transform_1(%arg0: i32) -> (i32, i32, i32) {
    %c0_i32 = arith.constant 0 : i32
    %c0_i32_0 = arith.constant 0 : i32
    %c0_i32_1 = arith.constant 0 : i32
    return %arg0, %c0_i32, %c0_i32_0 : i32, i32, i32
  }
  func.func @transform_2(%arg0: i32) -> (i32, i32, i32) {
    %c0_i32 = arith.constant 0 : i32
    %c0_i32_0 = arith.constant 0 : i32
    %c0_i32_1 = arith.constant 0 : i32
    return %arg0, %c0_i32, %c0_i32_0 : i32, i32, i32
  }
  func.func @transform_3(%arg0: i32) -> (i32, i32, i32) {
    %c0_i32 = arith.constant 0 : i32
    %c0_i32_0 = arith.constant 0 : i32
    %c0_i32_1 = arith.constant 0 : i32
    return %arg0, %c0_i32, %c0_i32_0 : i32, i32, i32
  }
  func.func @transform_4(%arg0: i32) -> (i32, i32, i32) {
    %c0_i32 = arith.constant 0 : i32
    %c0_i32_0 = arith.constant 0 : i32
    %c0_i32_1 = arith.constant 0 : i32
    return %arg0, %c0_i32, %c0_i32_0 : i32, i32, i32
  }
  func.func @transform_5(%arg0: i32) -> (i32, i32, i32) {
    %c0_i32 = arith.constant 0 : i32
    %c0_i32_0 = arith.constant 0 : i32
    %c0_i32_1 = arith.constant 0 : i32
    return %arg0, %c0_i32, %c0_i32_0 : i32, i32, i32
  }
  func.func @transform_6(%arg0: i32) -> (i32, i32, i32) {
    %c0_i32 = arith.constant 0 : i32
    %c0_i32_0 = arith.constant 0 : i32
    %c0_i32_1 = arith.constant 0 : i32
    return %arg0, %c0_i32, %c0_i32_0 : i32, i32, i32
  }
}

</mosaic_0001>

<bundles_post_ra>
// kernel: tpu_custom_call.1
= control target key start
LH: loop header
LB: loop body
LE: loop exit
PB: predicated region body
PF: predicated region fallthrough
CT: control target
= control target key end

     0   :  { %s1787_s0 = inlined_call_operand.hbm [shape: bf16[8,64,64], index: 0, kind: input, shape index: {}]   ;;  %s1788_s1 = inlined_call_operand.hbm [shape: bf16[8,32,32], index: 1, kind: input, shape index: {}]   ;;  %s1789_s2 = inlined_call_operand.hbm [shape: bf16[8,32,32], index: 2, kind: input, shape index: {}]   ;;  %s1790_s3 = inlined_call_operand.vmem [shape: f32[8,3,32], index: 3, kind: input, shape index: {}]   ;;  %s1791_s4 = inlined_call_operand.vmem [shape: f32[8,4,32], index: 4, kind: input, shape index: {}]   ;;  %s1792_s5 = inlined_call_operand.vmem [shape: f32[8,1,32], index: 5, kind: input, shape index: {}]   ;;  %s1793_s6 = inlined_call_operand.hbm [shape: f32[8,4,32], index: 6, kind: output, shape index: {}]  }
   0x1   :  { %1804 = sst [smem:[#allocation17_spill]] %s1788_s1 }
   0x2   :  { %11 = vsyncpa [#allocation3], 0 }
   0x3   :  { %13 = vsyncpa [#allocation3 + $0x1], 0 }
   0x4   :  { %14 = vsyncpa [#allocation6], 0 }
   0x5   :  { %16 = vsyncpa [#allocation6 + $0x1], 0 }
   0x6   :  { %17 = vsyncpa [#allocation4], 0 }
   0x7   :  { %19 = vsyncpa [#allocation4 + $0x1], 0  ;;  %s1460_s21 = smov 0   ;;  %s1462_s22 = smov 0  }
   0x8   :  { %s1464_s23 = smov 0   ;;  %s1466_s24 = smov 0  }
   0x9 LB: > { %1805 = sst [smem:[#allocation12_spill]] %s1407_s21  ;;  %s1481_s25 = sadd.s32 4294967295, %s1419_s24   ;;  %s1419_s24 = sphi %s1466_s24, %s1821_s24   ;;  %s1415_s23 = sphi %s1464_s23, %s1823_s23   ;;  %s1411_s22 = sphi %s1462_s22, %s1825_s22   ;;  %s1407_s21 = sphi %s1460_s21, %s1824_s21  }
   0xa   : > { %1806 = sst [smem:[#allocation13_spill]] %s1415_s23  ;;  %s1072_s26 = sadd.s32 4294967294, %s1419_s24  }
   0xb   : > { %s1485_s27 = sadd.s32 1, %s1419_s24   ;;  %s32_s28 = sadd.s32 1, %s1415_s23 }
   0xc   : > { %1807 = sst [smem:[#allocation14_spill]] %s1485_s27  ;;  %s29_s29 = ssub.s32 %s1419_s24, %s1485_s27 }
   0xd   : > { %p39_p0 = scmp.ne.s32.totalorder %s1415_s23, %s1411_s22  ;;  %p30_p1 = scmp.eq.s32.totalorder %s29_s29, 0 }
   0xe   : > { %p40_p2 = scmp.eq.s32.totalorder %s1419_s24, 0  ;;  %p45_p3 = scmp.ne.s32.totalorder %s1411_s22, %s1407_s21 }
   0xf   : > { %p46_p4 = scmp.eq.s32.totalorder %s1481_s25, 0  ;;  %p199_p7 = scmp.eq.s32.totalorder %s1481_s25, 7 }
  0x10   : > { %s1497_s30 = scalar_select %p30_p1, %s1415_s23, %s32_s28  }
  0x11   : > { %p41_p5 = por %p40_p2, %p39_p0  ;;  %p1499_p6 = por %p46_p4, %p45_p3 }
  0x12   : > { %1808 = sst [smem:[#allocation15_spill]] %s1497_s30  ;;  %p205_p8 = scmp.eq.s32.totalorder %s1072_s26, 7 }
  0x13   : > { %p1180_p9 = scmp.lt.s32.totalorder %s1419_s24, 8  ;;  %p1505_p10 = por %p199_p7, %p39_p0 }
  0x14   : > { %p1509_p11 = por %p205_p8, %p45_p3  ;;  %s1514_s10 = sand.u32 1, %s1415_s23  }
  0x15   : > { %p1516_p12 = pnand %p1180_p9, %p41_p5  ;;  %s247_s12 = sand.u32 1, %s1419_s24  }
  0x16   : > { %s1811_s9 = scalar_select %p1509_p11, 1, 0 }
  0x17   : > { %s1794_s13 = sshll.u32 %s1514_s10, 4  ;;  %s1148_s14 = sshll.u32 %s1419_s24, 4 }
  0x18   : > { %1812 = sst [smem:[#allocation16_spill]] %s1811_s9  ;;  %s251_s18 = scalar_lea.vmem [#allocation5], %s1794_s13 }
  0x19   : > { %s1814_s1 = sld [smem:[#allocation17_spill]]  ;;  %s259_s19 = sshll.u32 %s251_s18, 4  ;;  %s260_s19 = int_to_ptr.vmem [resolvable:$true] %s259_s19 }
  0x1a   : > { %s1528_s26 = scalar_lea.sflag [#allocation6], %s247_s12  ;;  %p1263_p0 = pneg %p1516_p12 }
  0x1f   : > { %s256_s17 = scalar_lea.hbm %s1814_s1, %s1148_s14  ;;  %s1266_s13 = scalar_lea.hbm %s1814_s1, 128 }
  0x20   : > { %s257_s20 = sshll.u32 %s256_s17, 4  ;;  %s258_s20 = int_to_ptr.hbm [resolvable:$true] %s257_s20 }
  0x21   : > { %s1259_s28 = sshra.s32 %s258_s20, 4  ;;  %s1260_s28 = int_to_ptr.hbm [resolvable:$true] %s1259_s28 }
  0x22   : > { %s1261_s29 = scalar_lea.hbm %s1260_s28, 16  ;;  %p1267_p3 = scmp.lt.s32.totalorder %s1260_s28, %s1814_s1 }
  0x23   : > { %p1262_p13 = scmp.ne.s32.totalorder %s1260_s28, %s1261_s29  ;;  %p1268_p4 = scmp.lt.s32.totalorder %s1266_s13, %s1261_s29 }
  0x25   : > { %p1264_p1 = pnand %p1263_p0, %p1262_p13  ;;  %p1269_p5 = por %p1268_p4, %p1267_p3 }
  0x27   : > { %p1265_p2 = pneg %p1264_p1 }
  0x29   : > { %p1270_p7 = pnand %p1269_p5, %p1265_p2 }
  0x2b   : > { %1273 = shalt.err (!%p1270_p7)
}
  0x2c   : > { %s1796_s12 = smov 64   ;;  %s1798_s30 = smov 4  }
  0x2d   : > { %1172 = dma.hbm_to_vmem [thread:$0]  (!%p1516_p12), %s258_s20, 256, %s260_s19, %s1528_s26, %s1796_s12, %s1796_s12, %s1798_s30  }
  0x2e   : > { %s278_s13 = scalar_lea.hbm %s1789_s2, %s1148_s14  ;;  %s1815_s29 = sshll.u32 %s1514_s10, 4 }
  0x2f   : > { %s273_s16 = scalar_lea.vmem [#allocation7], %s1815_s29  ;;  %s279_s17 = sshll.u32 %s278_s13, 4  ;;  %s1554_s17 = int_to_ptr.hbm [resolvable:$true] %s279_s17 }
  0x30   : > { %s281_s18 = sshll.u32 %s273_s16, 4  ;;  %p1084_p8 = scmp.ge.s32.totalorder %s1419_s24, 1  ;;  %s1552_s18 = int_to_ptr.vmem [resolvable:$true] %s281_s18 }
  0x31   : > { %p309_p9 = scmp.lt.s32.totalorder %s1419_s24, 9  ;;  %s1075_s1 = sshll.u32 %s1514_s10, 5 }
  0x32   : > { %s1147_s23 = sshll.u32 %s1419_s24, 5  ;;  %s229_s28 = scalar_lea.vmem [#allocation2], %s1075_s1 }
  0x33   : > { %p1560_p13 = pnand %p1084_p8, %p309_p9  ;;  %s234_s15 = scalar_lea.hbm %s1787_s0, %s1147_s23 }
  0x34   : > { %s237_s29 = sshll.u32 %s229_s28, 4  ;;  %s235_s13 = sshll.u32 %s234_s15, 4  ;;  %s238_s29 = int_to_ptr.vmem [resolvable:$true] %s237_s29  ;;  %s236_s13 = int_to_ptr.hbm [resolvable:$true] %s235_s13 }
  0x35   : > { %s226_s16 = scalar_lea.sflag [#allocation3], %s1514_s10  ;;  %s1289_s12 = sshra.s32 %s236_s13, 4  ;;  %s1290_s12 = int_to_ptr.hbm [resolvable:$true] %s1289_s12 }
  0x36   : > { %s1291_s30 = scalar_lea.hbm %s1290_s12, 32  ;;  %s1296_s21 = scalar_lea.hbm %s1787_s0, 256 }
  0x37   : > { %p1292_p1 = scmp.ne.s32.totalorder %s1290_s12, %s1291_s30  ;;  %p1297_p4 = scmp.lt.s32.totalorder %s1290_s12, %s1787_s0 }
  0x38   : > { %p1298_p5 = scmp.lt.s32.totalorder %s1296_s21, %s1291_s30 }
  0x39   : > { %p1294_p2 = pnand %p1292_p1, %p1263_p0 }
  0x3a   : > { %p1299_p7 = por %p1298_p5, %p1297_p4 }
  0x3b   : > { %p1295_p3 = pneg %p1294_p2 }
  0x3d   : > { %p1300_p8 = pnand %p1299_p7, %p1295_p3 }
  0x3f   : > { %1303 = shalt.err (!%p1300_p8)
}
  0x40   : > { %s1817_s1 = smov 4   ;;  %s1818_s10 = smov 64  }
  0x41   : > { %1169 = dma.hbm_to_vmem [thread:$0]  (!%p1516_p12), %s236_s13, 512, %s238_s29, %s226_s16, %s1818_s10, %s1818_s10, %s1817_s1  }
  0x42   : > { %s1319_s14 = sshra.s32 %s1554_s17, 4  ;;  %s1326_s9 = scalar_lea.hbm %s1789_s2, 128  ;;  %s1320_s14 = int_to_ptr.hbm [resolvable:$true] %s1319_s14 }
  0x43   : > { %s1321_s27 = scalar_lea.hbm %s1320_s14, 16  ;;  %p1327_p3 = scmp.lt.s32.totalorder %s1320_s14, %s1789_s2 }
  0x44   : > { %p1322_p9 = scmp.ne.s32.totalorder %s1320_s14, %s1321_s27  ;;  %p1328_p4 = scmp.lt.s32.totalorder %s1326_s9, %s1321_s27 }
  0x46   : > { %p1324_p1 = pnand %p1322_p9, %p1263_p0  ;;  %p1329_p5 = por %p1328_p4, %p1327_p3 }
  0x48   : > { %p1325_p2 = pneg %p1324_p1 }
  0x4a   : > { %p1330_p7 = pnand %p1329_p5, %p1325_p2 }
  0x4c   : > { %1333 = shalt.err (!%p1330_p7)
}
  0x4d   : > { %1175 = dma.hbm_to_vmem [thread:$0]  (!%p1516_p12), %s1554_s17, 256, %s1552_s18, %s1528_s26, %s1818_s10, %s1818_s10, %s1817_s1  }
  0x4e   : > { %313 = sbr.rel (%p1560_p13) target bundleno = 2179 (0x883), region = 44  ;;  %s1603_s28 = sand.u32 (!%p1560_p13), 1, %s1411_s22  }
  0x4f   : > { %s1085_s29 = sshll.u32 (!%p1560_p13), %s1603_s28, 5  ;;  %s316_s13 = scalar_lea.sflag (!%p1560_p13), [#allocation3], %s1603_s28 }
  0x50   : > { %s319_s16 = scalar_lea.vmem (!%p1560_p13), [#allocation2], %s1085_s29 }
  0x53   : > { %1394 = dma.done.wait (%p1499_p6), %s316_s13, 512  }
  0x54   : > { %1396 = vsyncadd (%p1499_p6), %s316_s13, 4294966784  ;;  %s325_s11 = sand.u32 1, %s1481_s25   ;;  %s1086_s26 = sshll.u32 %s1603_s28, 4 }
  0x55   : > { %s326_s18 = scalar_lea.sflag [#allocation6], %s325_s11  ;;  %s1615_s17 = scalar_lea.vmem [#allocation5], %s1086_s26 }
  0x56   : > { %1398 = dma.done.wait (%p1499_p6), %s326_s18, 512  }
  0x57   : > { %1400 = vsyncadd (%p1499_p6), %s326_s18, 4294966784  ;;  %p390_p12 = scmp.lt.s32.totalorder %s1481_s25, 7  ;;  %v1629_v1 = vld [vmem:[%s319_s16 + $0x18] sm:$0xff]  ;;  %s1423_s10 = smov 32   ;;  %v1152_v2 = vld [vmem:[%s319_s16 + $0x10] sm:$0xff]  ;;  %vm428_vm0 = vcmask 261120  }
  0x58   : > { %463 = vmatpush.bf16.msra.mxu0 %v1629_v1  ;;  %600 = vmatpush.bf16.msra.mxu3 %v1629_v1  ;;  %v1634_v3 = vld [vmem:[%s319_s16 + $0x8] sm:$0xff]  ;;  %v1638_v4 = vld [vmem:[%s319_s16] sm:$0xff]  ;;  %vm455_vm1 = vcmask 523264   ;;  %s339_s15 = scalar_lea.vmem [#allocation7], %s1086_s26  ;;  %s1424_s29 = smov 96   ;;  %vm584_vm10 = vcmask 253952  }
  0x59   : > { %s391_s19 = scalar_select %p390_p12, %s1481_s25, 7  ;;  %v1671_v17 = vld [vmem:[%s1615_s17 + $0x8] sm:$0xff]  ;;  %v1677_v19 = vld [vmem:[%s1615_s17] sm:$0xff] }
  0x5a   : > { %v1157_v18 = vld [vmem:[%s339_s15 + $0x8] sm:$0xff]  ;;  %571 = vmatpush.bf16.msra.mxu2 %v1671_v17  ;;  %v1156_v20 = vld [vmem:[%s339_s15] sm:$0xff]  ;;  %s1088_s13 = sshll.u32 %s1603_s28, 2  ;;  %s1144_s11 = sshll.u32 %s1481_s25, 2 }
  0x5b   : > { %s1626_s1 = scalar_lea.vmem %s1792_s5, %s391_s19  ;;  %s1089_s7 = sshll.u32 %s391_s19, 2  ;;  %543 = vmatpush.bf16.msra.mxu1 %v1157_v18 }
  0x5c   : > { %v1218_v0 = vld [vmem:[%s1626_s1] ss:$0 sm:$0xff]  ;;  %464 = vmatpush.bf16.msra.mxu0 %v1152_v2  ;;  %601 = vmatpush.bf16.msra.mxu3 %v1152_v2  ;;  %s1644_s21 = scalar_lea.vmem %s1790_s3, %s1089_s7  ;;  %s1655_s12 = scalar_lea.vmem %s1791_s4, %s1089_s7 }
  0x5d   : > { %425 = vrot.lane.b32.xlu0 %v1218_v0, %s1423_s10  ;;  %v419_v5 = vld [vmem:[%s1644_s21 + $0x1] sm:$0x1]  ;;  %v422_v6 = vld [vmem:[%s1655_s12] sm:$0x1]  ;;  %v1695_v57 = vld [vmem:[%s1644_s21 + $0x2] sm:$0x1]  ;;  %s921_s17 = scalar_lea.hbm %s1793_s6, %s1144_s11 }
  0x5e   : > { %v1666_v11 = vld [vmem:[%s1644_s21] sm:$0x1]  ;;  %v516_v22 = vpack.c.bf16 %v422_v6, %v422_v6  ;;  %572 = vmatpush.bf16.msra.mxu2 %v1677_v19  ;;  %v586_v55 = vld [vmem:[%s1655_s12 + $0x1] sm:$0x1]  ;;  %s1703_s16 = scalar_lea.vmem [#allocation8], %s1088_s13  ;;  %s925_s20 = sshll.u32 %s921_s17, 4  ;;  %s926_s20 = int_to_ptr.hbm [resolvable:$true] %s925_s20 }
  0x5f   : > { %544 = vmatpush.bf16.msra.mxu1 %v1156_v20  ;;  %v421_v44 = vld [vmem:[%s1626_s1] sm:$0x1]  ;;  %v649_v56 = vpack.c.bf16 %v586_v55, %v586_v55  ;;  %s923_s19 = sshll.u32 %s1703_s16, 4  ;;  %s911_s23 = scalar_lea.sflag [#allocation4], %s1603_s28  ;;  %s924_s19 = int_to_ptr.vmem [resolvable:$true] %s923_s19 }
  0x60   : > { %465 = vmatpush.bf16.msra.mxu0 %v1634_v3  ;;  %602 = vmatpush.bf16.msra.mxu3 %v1634_v3  ;;  %s1363_s25 = sshra.s32 %s926_s20, 4  ;;  %s1369_s14 = scalar_lea.hbm %s1793_s6, 32  ;;  %s1364_s25 = int_to_ptr.hbm [resolvable:$true] %s1363_s25 }
  0x61   : > { %1127 = vmatmul.msk.bf16.vlgmr.msra.gmra.mxu2 %vm428_vm0, %v516_v22  ;;  %s1365_s1 = scalar_lea.hbm %s1364_s25, 4  ;;  %p1370_p8 = scmp.lt.s32.totalorder %s1364_s25, %s1793_s6 }
  0x62   : > { %680 = vmatpush.bf16.msrb.mxu2 %v1671_v17  ;;  %p1366_p6 = scmp.ne.s32.totalorder %s1364_s25, %s1365_s1  ;;  %p1371_p9 = scmp.lt.s32.totalorder %s1369_s14, %s1365_s1 }
  0x63   : > { %664 = vmatpush.bf16.msrb.mxu1 %v1157_v18 }
  0x64   : > { %466 = vmatpush.bf16.msra.mxu0 %v1638_v4  ;;  %603 = vmatpush.bf16.msra.mxu3 %v1638_v4  ;;  %p1367_p0 = pnand %p1366_p6, %p1505_p10  ;;  %p1372_p1 = por %p1371_p9, %p1370_p8 }
  0x65   : > { %493 = vrot.lane.b32.xlu0 %v419_v5, %s1423_s10 }
  0x66   : > { %681 = vmatpush.bf16.msrb.mxu2 %v1677_v19  ;;  %p1368_p13 = pneg %p1367_p0 }
  0x67   : > { %665 = vmatpush.bf16.msrb.mxu1 %v1156_v20 }
  0x68   : > { %708 = vmatpush.bf16.msrb.mxu0 %v1629_v1  ;;  %772 = vmatpush.bf16.msrb.mxu3 %v1157_v18  ;;  %p1373_p2 = pnand %p1372_p1, %p1368_p13 }
  0x6a   : > { %816 = vmatpush.bf16.msra.mxu2 %v1629_v1 }
  0x6c   : > { %709 = vmatpush.bf16.msrb.mxu0 %v1152_v2  ;;  %773 = vmatpush.bf16.msrb.mxu3 %v1156_v20 }
  0x6e   : > { %817 = vmatpush.bf16.msra.mxu2 %v1152_v2 }
  0x70   : > { %710 = vmatpush.bf16.msrb.mxu0 %v1634_v3 }
  0x71   : > { %1132 = vmatmul.msk.bf16.vlgmr.msrb.gmra.mxu2 %vm428_vm0, %v649_v56 }
  0x72   : > { %818 = vmatpush.bf16.msra.mxu2 %v1634_v3 }
  0x74   : > { %711 = vmatpush.bf16.msrb.mxu0 %v1638_v4 }
  0x76   : > { %819 = vmatpush.bf16.msra.mxu2 %v1638_v4 }
  0xcf   : > { %v1658_v7 = vpop.permute.xlu0 %425 }
  0xd0   : > { %v429_v8 = vsel %vm428_vm0, %v422_v6, %v1658_v7 }
  0xd1   : > { %v430_v9 = vpack.c.bf16 %v429_v8, %v429_v8 }
  0xd3   : > { %1107 = vmatmul.msk.bf16.vlgmr.msra.gmra.mxu0 %vm455_vm1, %v430_v9 }
  0xd4   : > { %880 = vmatpush.bf16.msra.mxu0 %v1157_v18 }
  0xd7   : > { %v1663_v10 = vpop.permute.xlu0 %493 }
  0xd8   : > { %881 = vmatpush.bf16.msra.mxu0 %v1156_v20 }
  0xe4   : > { %v574_v52 = vpop.f32.mrf.mxu2 }
  0xec   : > { %v576_v54 = vpop.f32.mrf.mxu2 }
 0x150   : > { %v468_v12 = vpop.f32.mrf.mxu0 }
 0x151   : > { %v472_v13 = vadd.f32 %v468_v12, %v1666_v11  ;;  %v496_v14 = vadd.f32 %v1663_v10, %v468_v12 }
 0x153   : > { %v1108_v15 = vmul.f32 -1.442695, %v472_v13  ;;  %v1109_v16 = vmul.f32 -1.442695, %v496_v14 }
 0x155   : > { %1219 = vpow2.f32 %v1108_v15 }
 0x156   : > { %1221 = vpow2.f32 %v1109_v16 }
 0x158   : > { %v470_v21 = vpop.f32.mrf.mxu0 }
 0x15b   : > { %v1220_v23 = vpop.eup %1219 }
 0x15c   : > { %v1222_v24 = vpop.eup %1221  ;;  %v476_v25 = vadd.f32 1.0, %v1220_v23 }
 0x15d   : > { %v500_v26 = vadd.f32 1.0, %v1222_v24  ;;  %v683_v24 = vpop.f32.mrf.mxu2 }
 0x15e   : > { %1223 = vrcp.f32 %v476_v25  ;;  %v488_v33 = vand.u32 2147483648, %v476_v25  ;;  %v486_v36 = vand.u32 2147483647, %v476_v25  ;;  %vm482_vm4 = vweird.f32 %v476_v25 }
 0x15f   : > { %1225 = vrcp.f32 %v500_v26  ;;  %v512_v34 = vand.u32 2147483648, %v500_v26  ;;  %v510_v38 = vand.u32 2147483647, %v500_v26  ;;  %vm506_vm5 = vweird.f32 %v500_v26 }
 0x160   : > { %v489_v41 = vor.u32 1.1754944e-38, %v488_v33  ;;  %vm487_vm8 = vcmp.eq.f32.partialorder %v486_v36, 8.507059e+37 }
 0x161   : > { %v513_v42 = vor.u32 1.1754944e-38, %v512_v34  ;;  %vm511_vm9 = vcmp.eq.f32.partialorder %v510_v38, 8.507059e+37 }
 0x164   : > { %v1224_v27 = vpop.eup %1223 }
 0x165   : > { %v1226_v28 = vpop.eup %1225  ;;  %v478_v29 = vmul.f32 %v1224_v27, %v476_v25  ;;  %vm483_vm2 = vweird.f32 %v1224_v27  ;;  %v685_v25 = vpop.f32.mrf.mxu2 }
 0x166   : > { %v502_v30 = vmul.f32 %v1226_v28, %v500_v26  ;;  %vm507_vm3 = vweird.f32 %v1226_v28  ;;  %vm484_vm6 = vmor %vm482_vm4, %vm483_vm2 }
 0x167   : > { %v479_v31 = vsub.f32 1.0, %v478_v29  ;;  %vm508_vm7 = vmor %vm506_vm5, %vm507_vm3 }
 0x168   : > { %v503_v32 = vsub.f32 1.0, %v502_v30 }
 0x169   : > { %v480_v35 = vmul.f32 %v1224_v27, %v479_v31 }
 0x16a   : > { %v504_v37 = vmul.f32 %v1226_v28, %v503_v32  ;;  %v694_v32 = vld [vmem:[%s1655_s12 + $0x2] sm:$0x1] }
 0x16b   : > { %v481_v39 = vadd.f32 %v1224_v27, %v480_v35  ;;  %v757_v33 = vpack.c.bf16 %v694_v32, %v694_v32 }
 0x16c   : > { %v505_v40 = vadd.f32 %v1226_v28, %v504_v37 }
 0x16d   : > { %v485_v43 = vsel %vm484_vm6, %v1224_v27, %v481_v39 }
 0x16e   : > { %v509_v45 = vsel %vm508_vm7, %v1226_v28, %v505_v40  ;;  %v490_v46 = vsel %vm487_vm8, %v489_v41, %v485_v43 }
 0x16f   : > { %v514_v47 = vsel %vm511_vm9, %v513_v42, %v509_v45  ;;  %v580_v48 = vsub.f32 1.0, %v490_v46 }
 0x170   : > { %v517_v49 = vmul.f32 %v514_v47, %v1658_v7 }
 0x171   : > { %v581_v50 = vmul.f32 %v580_v48, %v421_v44 }
 0x172   : > { %v518_v51 = vpack.c.bf16 %v517_v49, %v517_v49 }
 0x174   : > { %520 = vrot.lane.b32.xlu1 %v518_v51, %s1424_s29 }
 0x1e6   : > { %v521_v53 = vpop.permute.xlu1 %520 }
 0x1e7   : > { %1118 = vmatmul.msk.bf16.vlgmr.msra.gmra.mxu1 %vm428_vm0, %v521_v53 }
 0x1e8   : > { %788 = vmatpush.bf16.msra.mxu1 %v1671_v17 }
 0x1ec   : > { %789 = vmatpush.bf16.msra.mxu1 %v1677_v19 }
 0x264   : > { %v546_v58 = vpop.f32.mrf.mxu1 }
 0x265   : > { %v575_v59 = vadd.f32 %v574_v52, %v546_v58 }
 0x267   : > { %v578_v60 = vadd.f32 %v575_v59, %v1695_v57 }
 0x269   : > { %1227 = vtanh.f32 %v578_v60 }
 0x26c   : > { %v548_v61 = vpop.f32.mrf.mxu1 }
 0x26f   : > { %v1228_v62 = vpop.eup %1227 }
 0x270   : > { %v582_v63 = vmul.f32 %v1228_v62, %v490_v46 }
 0x272   : > { %v1699_v0 = vadd.f32 %v582_v63, %v581_v50 }
 0x274   : > { %588 = vrot.lane.b32.xlu1 %v1699_v0, %s1423_s10  ;;  %585 = vst.msk [vmem:[%s1703_s16] sm:$0x1] %vm584_vm10, %v1699_v0 }
 0x2e6   : > { %v589_v1 = vpop.permute.xlu1 %588 }
 0x2e7   : > { %v591_v2 = vsel %vm428_vm0, %v586_v55, %v589_v1 }
 0x2e8   : > { %v592_v3 = vpack.c.bf16 %v591_v2, %v591_v2 }
 0x2ea   : > { %1128 = vmatmul.msk.bf16.vlgmr.msra.gmra.mxu3 %vm455_vm1, %v592_v3 }
 0x2eb   : > { %896 = vmatpush.bf16.msra.mxu3 %v1671_v17 }
 0x2ef   : > { %897 = vmatpush.bf16.msra.mxu3 %v1677_v19 }
 0x36d   : > { %v605_v4 = vpop.f32.mrf.mxu3 }
 0x36e   : > { %v629_v5 = vadd.f32 %v605_v4, %v1663_v10  ;;  %v609_v27 = vadd.f32 %v605_v4, %v1666_v11 }
 0x370   : > { %v1130_v6 = vmul.f32 -1.442695, %v629_v5  ;;  %v1129_v28 = vmul.f32 -1.442695, %v609_v27 }
 0x372   : > { %1229 = vpow2.f32 %v1130_v6 }
 0x375   : > { %v607_v7 = vpop.f32.mrf.mxu3 }
 0x378   : > { %v1230_v8 = vpop.eup %1229 }
 0x379   : > { %v633_v9 = vadd.f32 1.0, %v1230_v8 }
 0x37b   : > { %1231 = vrcp.f32 %v633_v9  ;;  %v645_v15 = vand.u32 2147483648, %v633_v9  ;;  %v643_v18 = vand.u32 2147483647, %v633_v9  ;;  %vm639_vm12 = vweird.f32 %v633_v9 }
 0x37c   : > { %1233 = vpow2.f32 %v1129_v28 }
 0x37d   : > { %v646_v17 = vor.u32 1.1754944e-38, %v645_v15  ;;  %vm644_vm14 = vcmp.eq.f32.partialorder %v643_v18, 8.507059e+37 }
 0x381   : > { %v1232_v12 = vpop.eup %1231 }
 0x382   : > { %v635_v13 = vmul.f32 %v1232_v12, %v633_v9  ;;  %vm640_vm11 = vweird.f32 %v1232_v12  ;;  %v1234_v29 = vpop.eup %1233 }
 0x383   : > { %vm641_vm13 = vmor %vm639_vm12, %vm640_vm11  ;;  %v613_v30 = vadd.f32 1.0, %v1234_v29 }
 0x384   : > { %v636_v14 = vsub.f32 1.0, %v635_v13 }
 0x385   : > { %1235 = vrcp.f32 %v613_v30  ;;  %v625_v38 = vand.u32 2147483648, %v613_v30  ;;  %vm619_vm2 = vweird.f32 %v613_v30  ;;  %v623_v40 = vand.u32 2147483647, %v613_v30 }
 0x386   : > { %v637_v16 = vmul.f32 %v1232_v12, %v636_v14 }
 0x387   : > { %v626_v44 = vor.u32 1.1754944e-38, %v625_v38  ;;  %vm624_vm4 = vcmp.eq.f32.partialorder %v623_v40, 8.507059e+37 }
 0x388   : > { %v638_v20 = vadd.f32 %v1232_v12, %v637_v16 }
 0x38a   : > { %v642_v19 = vsel %vm641_vm13, %v1232_v12, %v638_v20 }
 0x38b   : > { %v647_v21 = vsel %vm644_vm14, %v646_v17, %v642_v19  ;;  %v1236_v31 = vpop.eup %1235  ;;  %v802_v19 = vld [vmem:[%s1655_s12 + $0x3] sm:$0x1] }
 0x38c   : > { %v650_v22 = vmul.f32 %v647_v21, %v589_v1  ;;  %v615_v34 = vmul.f32 %v1236_v31, %v613_v30  ;;  %vm620_vm15 = vweird.f32 %v1236_v31  ;;  %v865_v21 = vpack.c.bf16 %v802_v19, %v802_v19 }
 0x38d   : > { %vm621_vm3 = vmor %vm619_vm2, %vm620_vm15 }
 0x38e   : > { %v651_v23 = vpack.c.bf16 %v650_v22, %v650_v22  ;;  %v616_v35 = vsub.f32 1.0, %v615_v34 }
 0x390   : > { %653 = vrot.lane.b32.xlu2 %v651_v23, %s1424_s29  ;;  %v617_v36 = vmul.f32 %v1236_v31, %v616_v35 }
 0x392   : > { %v618_v37 = vadd.f32 %v1236_v31, %v617_v36 }
 0x394   : > { %v622_v42 = vsel %vm621_vm3, %v1236_v31, %v618_v37 }
 0x395   : > { %v627_v45 = vsel %vm624_vm4, %v626_v44, %v622_v42 }
 0x396   : > { %v689_v47 = vsub.f32 1.0, %v627_v45 }
 0x398   : > { %v690_v49 = vmul.f32 %v689_v47, %v1699_v0 }
 0x3ea   : > { %v654_v26 = vpop.permute.xlu2 %653 }
 0x3eb   : > { %1131 = vmatmul.msk.bf16.vlgmr.msrb.gmra.mxu1 %vm428_vm0, %v654_v26 }
 0x3fb   : > { %1137 = vmatmul.msk.bf16.vlgmr.msra.gmra.mxu1 %vm428_vm0, %v757_v33 }
 0x468   : > { %v667_v39 = vpop.f32.mrf.mxu1 }
 0x469   : > { %v684_v41 = vadd.f32 %v683_v24, %v667_v39 }
 0x46b   : > { %v687_v43 = vadd.f32 %v684_v41, %v1695_v57 }
 0x46d   : > { %1237 = vtanh.f32 %v687_v43 }
 0x470   : > { %v669_v46 = vpop.f32.mrf.mxu1 }
 0x473   : > { %v1238_v48 = vpop.eup %1237 }
 0x474   : > { %v691_v50 = vmul.f32 %v1238_v48, %v627_v45 }
 0x476   : > { %v1720_v51 = vadd.f32 %v691_v50, %v690_v49 }
 0x478   : > { %696 = vrot.lane.b32.xlu2 %v1720_v51, %s1423_s10  ;;  %693 = vst.msk [vmem:[%s1703_s16 + $0x1] sm:$0x1] %vm584_vm10, %v1720_v51  ;;  %v791_v12 = vpop.f32.mrf.mxu1 }
 0x480   : > { %v793_v13 = vpop.f32.mrf.mxu1 }
 0x4d2   : > { %v697_v52 = vpop.permute.xlu2 %696 }
 0x4d3   : > { %v699_v53 = vsel %vm428_vm0, %v694_v32, %v697_v52 }
 0x4d4   : > { %v700_v54 = vpack.c.bf16 %v699_v53, %v699_v53 }
 0x4d6   : > { %1133 = vmatmul.msk.bf16.vlgmr.msrb.gmra.mxu0 %vm455_vm1, %v700_v54 }
 0x553   : > { %v713_v55 = vpop.f32.mrf.mxu0 }
 0x554   : > { %v737_v56 = vadd.f32 %v713_v55, %v1663_v10  ;;  %v717_v15 = vadd.f32 %v713_v55, %v1666_v11 }
 0x556   : > { %v1135_v58 = vmul.f32 -1.442695, %v737_v56  ;;  %v1134_v16 = vmul.f32 -1.442695, %v717_v15 }
 0x558   : > { %1239 = vpow2.f32 %v1135_v58 }
 0x55b   : > { %v715_v59 = vpop.f32.mrf.mxu0 }
 0x55e   : > { %v1240_v60 = vpop.eup %1239 }
 0x55f   : > { %v741_v61 = vadd.f32 1.0, %v1240_v60 }
 0x561   : > { %1241 = vrcp.f32 %v741_v61  ;;  %v753_v1 = vand.u32 2147483648, %v741_v61  ;;  %v751_v3 = vand.u32 2147483647, %v741_v61  ;;  %vm747_vm6 = vweird.f32 %v741_v61 }
 0x562   : > { %1243 = vpow2.f32 %v1134_v16 }
 0x563   : > { %v754_v5 = vor.u32 1.1754944e-38, %v753_v1  ;;  %vm752_vm8 = vcmp.eq.f32.partialorder %v751_v3, 8.507059e+37 }
 0x567   : > { %v1242_v62 = vpop.eup %1241 }
 0x568   : > { %v743_v63 = vmul.f32 %v1242_v62, %v741_v61  ;;  %vm748_vm5 = vweird.f32 %v1242_v62  ;;  %v1244_v18 = vpop.eup %1243 }
 0x569   : > { %vm749_vm7 = vmor %vm747_vm6, %vm748_vm5  ;;  %v721_v20 = vadd.f32 1.0, %v1244_v18 }
 0x56a   : > { %v744_v0 = vsub.f32 1.0, %v743_v63 }
 0x56b   : > { %1245 = vrcp.f32 %v721_v20  ;;  %v733_v26 = vand.u32 2147483648, %v721_v20  ;;  %vm727_vm11 = vweird.f32 %v721_v20  ;;  %v731_v28 = vand.u32 2147483647, %v721_v20 }
 0x56c   : > { %v745_v2 = vmul.f32 %v1242_v62, %v744_v0 }
 0x56d   : > { %v734_v32 = vor.u32 1.1754944e-38, %v733_v26  ;;  %vm732_vm13 = vcmp.eq.f32.partialorder %v731_v28, 8.507059e+37 }
 0x56e   : > { %v746_v4 = vadd.f32 %v1242_v62, %v745_v2 }
 0x570   : > { %v750_v6 = vsel %vm749_vm7, %v1242_v62, %v746_v4 }
 0x571   : > { %v755_v7 = vsel %vm752_vm8, %v754_v5, %v750_v6  ;;  %v1246_v17 = vpop.eup %1245 }
 0x572   : > { %v758_v8 = vmul.f32 %v755_v7, %v697_v52  ;;  %v723_v22 = vmul.f32 %v1246_v17, %v721_v20  ;;  %vm728_vm9 = vweird.f32 %v1246_v17 }
 0x573   : > { %vm729_vm12 = vmor %vm727_vm11, %vm728_vm9 }
 0x574   : > { %v759_v9 = vpack.c.bf16 %v758_v8, %v758_v8  ;;  %v724_v23 = vsub.f32 1.0, %v723_v22 }
 0x576   : > { %761 = vrot.lane.b32.xlu0 %v759_v9, %s1424_s29  ;;  %v725_v24 = vmul.f32 %v1246_v17, %v724_v23 }
 0x578   : > { %v726_v25 = vadd.f32 %v1246_v17, %v725_v24 }
 0x57a   : > { %v730_v30 = vsel %vm729_vm12, %v1246_v17, %v726_v25 }
 0x57b   : > { %v735_v33 = vsel %vm732_vm13, %v734_v32, %v730_v30 }
 0x57c   : > { %v797_v35 = vsub.f32 1.0, %v735_v33 }
 0x57e   : > { %v798_v37 = vmul.f32 %v797_v35, %v1720_v51 }
 0x5e8   : > { %v762_v14 = vpop.permute.xlu0 %761 }
 0x5e9   : > { %1136 = vmatmul.msk.bf16.vlgmr.msrb.gmra.mxu3 %vm428_vm0, %v762_v14 }
 0x5f9   : > { %1142 = vmatmul.msk.bf16.vlgmr.msra.gmra.mxu3 %vm428_vm0, %v865_v21 }
 0x66c   : > { %v775_v27 = vpop.f32.mrf.mxu3 }
 0x66d   : > { %v792_v29 = vadd.f32 %v791_v12, %v775_v27 }
 0x66f   : > { %v795_v31 = vadd.f32 %v792_v29, %v1695_v57 }
 0x671   : > { %1247 = vtanh.f32 %v795_v31 }
 0x674   : > { %v777_v34 = vpop.f32.mrf.mxu3 }
 0x677   : > { %v1248_v36 = vpop.eup %1247 }
 0x678   : > { %v799_v38 = vmul.f32 %v1248_v36, %v735_v33 }
 0x67a   : > { %v1737_v39 = vadd.f32 %v799_v38, %v798_v37 }
 0x67c   : > { %804 = vrot.lane.b32.xlu1 %v1737_v39, %s1423_s10  ;;  %801 = vst.msk [vmem:[%s1703_s16 + $0x2] sm:$0x1] %vm584_vm10, %v1737_v39  ;;  %v899_v61 = vpop.f32.mrf.mxu3 }
 0x684   : > { %v901_v62 = vpop.f32.mrf.mxu3 }
 0x6ee   : > { %v805_v40 = vpop.permute.xlu1 %804 }
 0x6ef   : > { %v807_v41 = vsel %vm428_vm0, %v802_v19, %v805_v40 }
 0x6f0   : > { %v808_v42 = vpack.c.bf16 %v807_v41, %v807_v41 }
 0x6f2   : > { %1138 = vmatmul.msk.bf16.vlgmr.msra.gmra.mxu2 %vm455_vm1, %v808_v42 }
 0x775   : > { %v821_v43 = vpop.f32.mrf.mxu2 }
 0x776   : > { %v845_v44 = vadd.f32 %v821_v43, %v1663_v10  ;;  %v825_v0 = vadd.f32 %v821_v43, %v1666_v11 }
 0x778   : > { %v1140_v45 = vmul.f32 -1.442695, %v845_v44  ;;  %v1139_v1 = vmul.f32 -1.442695, %v825_v0 }
 0x77a   : > { %1249 = vpow2.f32 %v1140_v45 }
 0x77d   : > { %v823_v46 = vpop.f32.mrf.mxu2 }
 0x780   : > { %v1250_v47 = vpop.eup %1249 }
 0x781   : > { %v849_v48 = vadd.f32 1.0, %v1250_v47 }
 0x783   : > { %1251 = vrcp.f32 %v849_v48  ;;  %v861_v52 = vand.u32 2147483648, %v849_v48  ;;  %v859_v54 = vand.u32 2147483647, %v849_v48  ;;  %vm855_vm15 = vweird.f32 %v849_v48 }
 0x784   : > { %1253 = vpow2.f32 %v1139_v1 }
 0x785   : > { %v862_v56 = vor.u32 1.1754944e-38, %v861_v52  ;;  %vm860_vm1 = vcmp.eq.f32.partialorder %v859_v54, 8.507059e+37 }
 0x789   : > { %v1252_v49 = vpop.eup %1251 }
 0x78a   : > { %v851_v50 = vmul.f32 %v1252_v49, %v849_v48  ;;  %vm856_vm14 = vweird.f32 %v1252_v49  ;;  %v1254_v2 = vpop.eup %1253 }
 0x78b   : > { %vm857_vm2 = vmor %vm855_vm15, %vm856_vm14  ;;  %v829_v3 = vadd.f32 1.0, %v1254_v2 }
 0x78c   : > { %v852_v51 = vsub.f32 1.0, %v851_v50 }
 0x78d   : > { %1255 = vrcp.f32 %v829_v3  ;;  %v841_v9 = vand.u32 2147483648, %v829_v3  ;;  %vm835_vm4 = vweird.f32 %v829_v3  ;;  %v839_v12 = vand.u32 2147483647, %v829_v3 }
 0x78e   : > { %v853_v53 = vmul.f32 %v1252_v49, %v852_v51 }
 0x78f   : > { %v842_v15 = vor.u32 1.1754944e-38, %v841_v9  ;;  %vm840_vm5 = vcmp.eq.f32.partialorder %v839_v12, 8.507059e+37 }
 0x790   : > { %v854_v55 = vadd.f32 %v1252_v49, %v853_v53 }
 0x792   : > { %v858_v58 = vsel %vm857_vm2, %v1252_v49, %v854_v55 }
 0x793   : > { %v863_v10 = vsel %vm860_vm1, %v862_v56, %v858_v58  ;;  %v1256_v4 = vpop.eup %1255 }
 0x794   : > { %v866_v59 = vmul.f32 %v863_v10, %v805_v40  ;;  %v831_v5 = vmul.f32 %v1256_v4, %v829_v3  ;;  %vm836_vm3 = vweird.f32 %v1256_v4 }
 0x796   : > { %v867_v60 = vpack.c.bf16 %v866_v59, %v866_v59  ;;  %v832_v6 = vsub.f32 1.0, %v831_v5 }
 0x798   : > { %869 = vrot.lane.b32.xlu2 %v867_v60, %s1424_s29  ;;  %v833_v7 = vmul.f32 %v1256_v4, %v832_v6 }
 0x79a   : > { %v834_v8 = vadd.f32 %v1256_v4, %v833_v7 }
 0x7f2   : > { %v870_v63 = vpop.permute.xlu2 %869 }
 0x7f3   : > { %1141 = vmatmul.msk.bf16.vlgmr.msra.gmra.mxu0 %vm428_vm0, %v870_v63  ;;  %vm837_vm0 = vmor %vm835_vm4, %vm836_vm3 }
 0x7f4   : > { %v838_v11 = vsel %vm837_vm0, %v1256_v4, %v834_v8 }
 0x7f5   : > { %v843_v18 = vsel %vm840_vm5, %v842_v15, %v838_v11 }
 0x7f6   : > { %v905_v20 = vsub.f32 1.0, %v843_v18 }
 0x7f8   : > { %v906_v21 = vmul.f32 %v905_v20, %v1737_v39 }
 0x870   : > { %v883_v13 = vpop.f32.mrf.mxu0 }
 0x871   : > { %v900_v14 = vadd.f32 %v899_v61, %v883_v13 }
 0x873   : > { %v903_v16 = vadd.f32 %v900_v14, %v1695_v57 }
 0x875   : > { %1257 = vtanh.f32 %v903_v16 }
 0x878   : > { %v885_v17 = vpop.f32.mrf.mxu0 }
 0x87b   : > { %v1258_v19 = vpop.eup %1257 }
 0x87c   : > { %v907_v22 = vmul.f32 %v1258_v19, %v843_v18 }
 0x87e   : > { %v908_v57 = vadd.f32 %v907_v22, %v906_v21 }
 0x880   : > { %909 = vst.msk [vmem:[%s1703_s16 + $0x3] sm:$0x1] %vm584_vm10, %v908_v57 }
 0x881   : > { %1376 = shalt.err (!%p1373_p2)
}
 0x882   : > { %1164 = dma.vmem_to_hbm [thread:$0]  (%p1505_p10), %s924_s19, 64, %s926_s20, %s911_s23  }
 0x883 PF: > { %s1819_s28 = sld [smem:[#allocation12_spill]]  ;;  %p1181_p3 = scmp.ge.s32.totalorder %s1419_s24, 2 }
 0x885   : > { %p1177_p4 = pnand %p1181_p3, %p1509_p11 }
 0x887   : > { %p1178_p5 = pneg %p1177_p4 }
 0x889   : > { %s937_s9 = sand.u32 1, %s1819_s28  }
 0x88a   : > { %s938_s12 = scalar_lea.sflag [#allocation4], %s937_s9 }
 0x88b   : > { %1402 = dma.done.wait (%p1178_p5), %s938_s12, 64  }
 0x88c   : > { %1404 = vsyncadd (%p1178_p5), %s938_s12, 4294967232  ;;  %s1821_s24 = sld [smem:[#allocation14_spill]]  ;;  %s1824_s21 = smov %s1411_s22 }
 0x88d   : > { %s1822_s15 = sld [smem:[#allocation13_spill]] }
 0x88e   : > { %s1823_s23 = sld [smem:[#allocation15_spill]] }
 0x892   : > { %p22_p7 = scmp.ge.s32.totalorder %s1821_s24, 10  }
 0x893   : > { %s1825_s22 = smov %s1822_s15 }
 0x894   :  { %24 = sbr.rel (!%p22_p7) target bundleno = 9 (0x9), region = 122 }
 0x899   :  { %944 = vsyncpa [#allocation3], 1 }
 0x89a   :  { %946 = vsyncpa [#allocation3 + $0x1], 1 }
 0x89b   :  { %947 = vsyncpa [#allocation6], 1 }
 0x89c   :  { %949 = vsyncpa [#allocation6 + $0x1], 1 }
 0x89d   :  { %950 = vsyncpa [#allocation4], 1 }
 0x89e   :  { %952 = vsyncpa [#allocation4 + $0x1], 1 }

</bundles_post_ra>
